<compile_context>
chip_gen: v7x
topology: tpu7x:2x2x1
jax: 0.10.0
libtpu: 0.0.40
codegen_flags: <defaults>
</compile_context>

<pallas_src>
import math
import functools

import jax
import jax.numpy as jnp
from jax.experimental import pallas as pl
from jax.experimental.pallas import tpu as pltpu


# ---------------------------------------------------------------------------
# Tiling helper
# ---------------------------------------------------------------------------

def _pick_tile(dim, pref, align):
    """Largest tile <= pref that divides `dim` and is a multiple of `align`;
    falls back to the full dim (a full-extent block is always legal on TPU)."""
    if dim <= pref:
        return dim
    t = (pref // align) * align
    while t >= align:
        if dim % t == 0:
            return t
        t -= align
    return dim


# ---------------------------------------------------------------------------
# Tiled linear:  y = x @ wt + b     (wt is the pre-transposed (d_in, d_out) weight)
# ---------------------------------------------------------------------------

def _linear_kernel(x_ref, wt_ref, b_ref, o_ref):
    # x: (tm, d_in)   wt: (d_in, tn)   b: (1, tn)   ->   o: (tm, tn)
    y = jnp.dot(x_ref[...], wt_ref[...], preferred_element_type=jnp.float32)
    o_ref[...] = (y + b_ref[...]).astype(o_ref.dtype)


def linear(x, wt, b, *, tm=512, tn=512):
    m, d_in = x.shape
    d_out = wt.shape[1]
    tm = _pick_tile(m, tm, 8)        # sublane-aligned M tile
    tn = _pick_tile(d_out, tn, 128)  # lane-dense N tile
    return pl.pallas_call(
        _linear_kernel,
        out_shape=jax.ShapeDtypeStruct((m, d_out), x.dtype),
        grid_spec=pltpu.PrefetchScalarGridSpec(
            num_scalar_prefetch=0,
            grid=(m // tm, d_out // tn),
            in_specs=[
                pl.BlockSpec((tm, d_in), lambda i, j: (i, 0)),
                pl.BlockSpec((d_in, tn), lambda i, j: (0, j)),
                pl.BlockSpec((1, tn), lambda i, j: (0, j)),
            ],
            out_specs=pl.BlockSpec((tm, tn), lambda i, j: (i, j)),
        ),
        compiler_params=pltpu.CompilerParams(
            dimension_semantics=("parallel", "parallel")),
    )(x, wt, b)


# ---------------------------------------------------------------------------
# Fused QKV projection: one pallas_call for the three (d_model -> d_model)
# projections, grid = (3, M-tiles, N-tiles).
# ---------------------------------------------------------------------------

def _qkv_kernel(x_ref, wt_ref, b_ref, o_ref):
    # x: (1, tm, d_in)  wt: (1, d_in, tn)  b: (1, 1, tn)  ->  o: (1, tm, tn)
    y = jnp.dot(x_ref[0], wt_ref[0], preferred_element_type=jnp.float32)
    o_ref[0] = (y + b_ref[0]).astype(o_ref.dtype)


def qkv_project(x_stack, wt_stack, b_stack, *, tm=512, tn=512):
    """x_stack: (3, M, d_in); wt_stack: (3, d_in, d_out); b_stack: (3, 1, d_out)."""
    nproj, m, d_in = x_stack.shape
    d_out = wt_stack.shape[2]
    tm = _pick_tile(m, tm, 8)
    tn = _pick_tile(d_out, tn, 128)
    return pl.pallas_call(
        _qkv_kernel,
        out_shape=jax.ShapeDtypeStruct((nproj, m, d_out), x_stack.dtype),
        grid_spec=pltpu.PrefetchScalarGridSpec(
            num_scalar_prefetch=0,
            grid=(nproj, m // tm, d_out // tn),
            in_specs=[
                pl.BlockSpec((1, tm, d_in), lambda p, i, j: (p, i, 0)),
                pl.BlockSpec((1, d_in, tn), lambda p, i, j: (p, 0, j)),
                pl.BlockSpec((1, 1, tn), lambda p, i, j: (p, 0, j)),
            ],
            out_specs=pl.BlockSpec((1, tm, tn), lambda p, i, j: (p, i, j)),
        ),
        compiler_params=pltpu.CompilerParams(
            dimension_semantics=("parallel", "parallel", "parallel")),
    )(x_stack, wt_stack, b_stack)


# ---------------------------------------------------------------------------
# KV-tiled online-softmax (flash) attention
# ---------------------------------------------------------------------------

def _flash_attn_kernel(q_ref, k_ref, v_ref, mask_ref, o_ref,
                       m_scr, l_scr, acc_scr, *, scale):
    kv = pl.program_id(2)

    @pl.when(kv == 0)
    def _():
        m_scr[...] = jnp.full_like(m_scr, -jnp.inf)
        l_scr[...] = jnp.zeros_like(l_scr)
        acc_scr[...] = jnp.zeros_like(acc_scr)

    q = q_ref[0] * scale                                 # scale folded into Q (tq*D muls)
    k = k_ref[0]
    # Contract on the last dims directly -> no in-kernel K transpose.
    s = jax.lax.dot_general(q, k, (((1,), (1,)), ((), ())),
                            preferred_element_type=jnp.float32)
    s = s + mask_ref[...].astype(jnp.float32)            # (tq, tkv) additive mask tile

    m_prev = m_scr[...]
    m_new = jnp.maximum(m_prev, jnp.max(s, axis=-1, keepdims=True))
    alpha = jnp.exp(m_prev - m_new)
    p = jnp.exp(s - m_new)
    l_scr[...] = alpha * l_scr[...] + jnp.sum(p, axis=-1, keepdims=True)
    acc_scr[...] = alpha * acc_scr[...] + jnp.dot(
        p.astype(v_ref.dtype), v_ref[0], preferred_element_type=jnp.float32)
    m_scr[...] = m_new

    @pl.when(kv == pl.num_programs(2) - 1)
    def _():
        inv_l = pl.reciprocal(l_scr[...], approx=True)   # EUP slot, ~free
        o_ref[0] = (acc_scr[...] * inv_l).astype(o_ref.dtype)


def flash_attention(q, k, v, mask2d, *, tq=256, tkv=512):
    """q: (B, H, Sq, D); k, v: (B, H, Sk, D); mask2d: (Sq, Sk) float additive mask."""
    B, H, Sq, D = q.shape
    Sk = k.shape[2]
    scale = 1.0 / math.sqrt(D)
    qf = q.reshape(B * H, Sq, D)
    kf = k.reshape(B * H, Sk, D)
    vf = v.reshape(B * H, Sk, D)
    tq = _pick_tile(Sq, tq, 8)        # sublane dim of Q / scores / output tiles
    tkv = _pick_tile(Sk, tkv, 128)    # lane dim of the mask/scores tile (also K/V sublanes)
    kernel = functools.partial(_flash_attn_kernel, scale=scale)
    out = pl.pallas_call(
        kernel,
        out_shape=jax.ShapeDtypeStruct((B * H, Sq, D), q.dtype),
        grid_spec=pltpu.PrefetchScalarGridSpec(
            num_scalar_prefetch=0,
            grid=(B * H, Sq // tq, Sk // tkv),
            in_specs=[
                pl.BlockSpec((1, tq, D), lambda bh, qi, ki: (bh, qi, 0)),
                pl.BlockSpec((1, tkv, D), lambda bh, qi, ki: (bh, ki, 0)),
                pl.BlockSpec((1, tkv, D), lambda bh, qi, ki: (bh, ki, 0)),
                pl.BlockSpec((tq, tkv), lambda bh, qi, ki: (qi, ki)),
            ],
            out_specs=pl.BlockSpec((1, tq, D), lambda bh, qi, ki: (bh, qi, 0)),
            scratch_shapes=[
                pltpu.VMEM((tq, 1), jnp.float32),   # running max
                pltpu.VMEM((tq, 1), jnp.float32),   # running denominator
                pltpu.VMEM((tq, D), jnp.float32),   # running numerator
            ],
        ),
        compiler_params=pltpu.CompilerParams(
            dimension_semantics=("parallel", "parallel", "arbitrary")),
    )(qf, kf, vf, mask2d)
    return out.reshape(B, H, Sq, D)


# ---------------------------------------------------------------------------
# Module
# ---------------------------------------------------------------------------

class MultiHeadAttention:
    def __init__(self, d_model, num_heads, key):
        assert d_model % num_heads == 0
        self.d_model = d_model
        self.num_heads = num_heads
        self.depth = d_model // num_heads
        ks = jax.random.split(key, 8)
        bound = 1.0 / math.sqrt(d_model)  # PyTorch nn.Linear default init range

        def init_linear(kw, kb):
            w = jax.random.uniform(kw, (d_model, d_model), jnp.float32,
                                   -bound, bound)
            b = jax.random.uniform(kb, (d_model,), jnp.float32, -bound, bound)
            return w, b

        self.wq = init_linear(ks[0], ks[1])
        self.wk = init_linear(ks[2], ks[3])
        self.wv = init_linear(ks[4], ks[5])
        self.dense = init_linear(ks[6], ks[7])

        # Kernel layouts built ONCE at init (no per-call W.T HBM pass).
        self.w_qkv_t = jnp.stack([self.wq[0].T, self.wk[0].T, self.wv[0].T])       # (3, d, d)
        self.b_qkv = jnp.stack([self.wq[1], self.wk[1], self.wv[1]])[:, None, :]   # (3, 1, d)
        self.wo_t = self.dense[0].T                                                 # (d, d)
        self.bo = self.dense[1][None, :]                                            # (1, d)
        # Per-projection transposed weights for the cross-attention (Sq != Sk) fallback.
        self.wq_t, self.bq = self.wq[0].T, self.wq[1][None, :]
        self.wk_t, self.bk = self.wk[0].T, self.wk[1][None, :]
        self.wv_t, self.bv = self.wv[0].T, self.wv[1][None, :]

    def split_heads(self, x, batch_size):
        # (B, S, d_model) -> (B, H, S, depth)
        x = x.reshape(batch_size, -1, self.num_heads, self.depth)
        return jnp.transpose(x, (0, 2, 1, 3))

    def __call__(self, query, key, value, mask):
        B, Sq, _ = query.shape
        Sk = key.shape[1]
        d = self.d_model

        if Sq == Sk:
            # One fused pallas_call for all three projections.
            x_stack = jnp.stack([query.reshape(B * Sq, d),
                                 key.reshape(B * Sk, d),
                                 value.reshape(B * Sk, d)])
            qkv = qkv_project(x_stack, self.w_qkv_t, self.b_qkv)   # (3, B*S, d)
            q, k, v = qkv[0], qkv[1], qkv[2]
        else:
            q = linear(query.reshape(B * Sq, d), self.wq_t, self.bq)
            k = linear(key.reshape(B * Sk, d), self.wk_t, self.bk)
            v = linear(value.reshape(B * Sk, d), self.wv_t, self.bv)

        q = self.split_heads(q.reshape(B, Sq, d), B)       # (B, H, Sq, depth)
        k = self.split_heads(k.reshape(B, Sk, d), B)
        v = self.split_heads(v.reshape(B, Sk, d), B)

        # TODO(synk): support per-batch / per-head float masks (currently the
        # mask must broadcast from (1, 1, Sq, Sk), as in the reference usage).
        mask2d = jnp.broadcast_to(mask, (1, 1, Sq, Sk)).reshape(Sq, Sk)
        mask2d = mask2d.astype(jnp.float32)

        attn = flash_attention(q, k, v, mask2d)            # (B, H, Sq, depth)

        # TODO(synk): fuse this merge-heads transpose into the output
        # projection's in_spec index_map instead of an XLA transpose pass.
        attn = jnp.transpose(attn, (0, 2, 1, 3)).reshape(B * Sq, d)
        out = linear(attn, self.wo_t, self.bo)
        return out.reshape(B, Sq, d)


# ---------------------------------------------------------------------------
# Pure-JAX reference for sanity checking
# ---------------------------------------------------------------------------

def reference_forward(mha, query, key, value, mask):
    def lin(x, wb):
        w, b = wb
        return x @ w.T + b

    B, Sq, _ = query.shape
    q = mha.split_heads(lin(query, mha.wq), B)
    k = mha.split_heads(lin(key, mha.wk), B)
    v = mha.split_heads(lin(value, mha.wv), B)
    scale = 1.0 / math.sqrt(mha.depth)
    s = jnp.einsum("bhqd,bhkd->bhqk", q, k) * scale + mask
    p = jax.nn.softmax(s, axis=-1)
    a = jnp.einsum("bhqk,bhkd->bhqd", p, v)
    a = jnp.transpose(a, (0, 2, 1, 3)).reshape(B, Sq, mha.d_model)
    return lin(a, mha.dense)


# ---------------------------------------------------------------------------
# Main
# ---------------------------------------------------------------------------

if __name__ == "__main__":
    B, S, d_model, num_heads = 2, 8, 32, 4

    root = jax.random.PRNGKey(0)
    k_param, k_q, k_k, k_v = jax.random.split(root, 4)

    mha = MultiHeadAttention(d_model, num_heads, k_param)

    query = jax.random.normal(k_q, (B, S, d_model), jnp.float32)
    key = jax.random.normal(k_k, (B, S, d_model), jnp.float32)
    value = jax.random.normal(k_v, (B, S, d_model), jnp.float32)

    # Causal float additive mask (0 on allowed, -1e9 on disallowed).
    causal = jnp.tril(jnp.ones((S, S), jnp.float32))
    mask = jnp.where(causal == 1, 0.0, -1e9).reshape(1, 1, S, S)

    out = mha(query, key, value, mask)
    out = jax.block_until_ready(out)

    ref = reference_forward(mha, query, key, value, mask)
    assert out.shape == (B, S, d_model)
    # Tolerance covers the EUP approx-reciprocal (~2^-12 rel) in the softmax.
    assert jnp.allclose(out, ref, atol=2e-3, rtol=2e-3), float(
        jnp.max(jnp.abs(out - ref)))

    print("KERNEL_OK")
</pallas_src>

<mosaic_0001>
module attributes {stable_mosaic.version = 11 : i64} {
  func.func @_qkv_kernel(%arg0: i32, %arg1: i32, %arg2: i32, %arg3: memref<1x16x32xf32, #tpu.memory_space<vmem>>, %arg4: memref<1x32x32xf32, #tpu.memory_space<vmem>>, %arg5: memref<1x1x32xf32, #tpu.memory_space<vmem>>, %arg6: memref<1x16x32xf32, #tpu.memory_space<vmem>>) attributes {dimension_semantics = [#tpu.dimension_semantics<parallel>, #tpu.dimension_semantics<parallel>, #tpu.dimension_semantics<parallel>], iteration_bounds = array<i64: 3, 1, 1>, scalar_prefetch = 0 : i64, scratch_operands = 0 : i64, tpu.core_type = #tpu.core_type<tc>, window_params = [{transform_indices = @transform_0, window_bounds = array<i64: 1, 16, 32>}, {transform_indices = @transform_1, window_bounds = array<i64: 1, 32, 32>}, {transform_indices = @transform_2, window_bounds = array<i64: 1, 1, 32>}, {transform_indices = @transform_3, window_bounds = array<i64: 1, 16, 32>}]} {
    %c0 = arith.constant 0 : index
    %c0_0 = arith.constant 0 : index
    %c0_1 = arith.constant 0 : index
    %0 = vector.load %arg3[%c0, %c0_0, %c0_1] : memref<1x16x32xf32, #tpu.memory_space<vmem>>, vector<1x16x32xf32>
    %1 = vector.shape_cast %0 : vector<1x16x32xf32> to vector<16x32xf32>
    %c0_2 = arith.constant 0 : index
    %c0_3 = arith.constant 0 : index
    %c0_4 = arith.constant 0 : index
    %2 = vector.load %arg4[%c0_2, %c0_3, %c0_4] : memref<1x32x32xf32, #tpu.memory_space<vmem>>, vector<1x32x32xf32>
    %3 = vector.shape_cast %2 : vector<1x32x32xf32> to vector<32x32xf32>
    %cst = arith.constant dense<0.000000e+00> : vector<16x32xf32>
    %4 = tpu.matmul %1, %3, %cst {dimension_numbers = #tpu.dot_dimension_numbers<[1], [0], [0], [1], [0, 0, 1, 1], [], []>} : vector<16x32xf32>, vector<32x32xf32>, vector<16x32xf32> -> vector<16x32xf32>
    %c0_5 = arith.constant 0 : index
    %c0_6 = arith.constant 0 : index
    %c0_7 = arith.constant 0 : index
    %5 = vector.load %arg5[%c0_5, %c0_6, %c0_7] : memref<1x1x32xf32, #tpu.memory_space<vmem>>, vector<1x1x32xf32>
    %6 = vector.shape_cast %5 : vector<1x1x32xf32> to vector<1x32xf32>
    %7 = vector.broadcast %6 : vector<1x32xf32> to vector<16x32xf32>
    %8 = arith.addf %4, %7 : vector<16x32xf32>
    %c0_8 = arith.constant 0 : index
    %c0_9 = arith.constant 0 : index
    %c0_10 = arith.constant 0 : index
    %9 = vector.load %arg6[%c0_8, %c0_9, %c0_10] : memref<1x16x32xf32, #tpu.memory_space<vmem>>, vector<1x16x32xf32>
    %10 = vector.shape_cast %9 : vector<1x16x32xf32> to vector<16x32xf32>
    %11 = vector.shape_cast %8 : vector<16x32xf32> to vector<1x16x32xf32>
    tpu.vector_store %arg6[%c0_8, %c0_9, %c0_10], %11 {strides = array<i32>} : memref<1x16x32xf32, #tpu.memory_space<vmem>>, vector<1x16x32xf32>,
    return
  }
  func.func @transform_0(%arg0: i32, %arg1: i32, %arg2: i32) -> (i32, i32, i32) {
    %c0_i32 = arith.constant 0 : i32
    %c0_i32_0 = arith.constant 0 : i32
    return %arg0, %arg1, %c0_i32 : i32, i32, i32
  }
  func.func @transform_1(%arg0: i32, %arg1: i32, %arg2: i32) -> (i32, i32, i32) {
    %c0_i32 = arith.constant 0 : i32
    %c0_i32_0 = arith.constant 0 : i32
    return %arg0, %c0_i32, %arg2 : i32, i32, i32
  }
  func.func @transform_2(%arg0: i32, %arg1: i32, %arg2: i32) -> (i32, i32, i32) {
    %c0_i32 = arith.constant 0 : i32
    %c0_i32_0 = arith.constant 0 : i32
    return %arg0, %c0_i32, %arg2 : i32, i32, i32
  }
  func.func @transform_3(%arg0: i32, %arg1: i32, %arg2: i32) -> (i32, i32, i32) {
    %c0_i32 = arith.constant 0 : i32
    return %arg0, %arg1, %arg2 : i32, i32, i32
  }
}

</mosaic_0001>

<bundles_post_ra>
// kernel: tpu_custom_call.1
= control target key start
LH: loop header
LB: loop body
LE: loop exit
PB: predicated region body
PF: predicated region fallthrough
CT: control target
= control target key end

     0   :  { %8 = vsyncpa [#allocation3], 0  ;;  %s1062_s0 = inlined_call_operand.hbm [shape: f32[3,16,32], index: 0, kind: input, shape index: {}]   ;;  %s1063_s1 = inlined_call_operand.hbm [shape: f32[3,32,32], index: 1, kind: input, shape index: {}]   ;;  %s1064_s2 = inlined_call_operand.vmem [shape: f32[3,1,32], index: 2, kind: input, shape index: {}]   ;;  %s1065_s3 = inlined_call_operand.hbm [shape: f32[3,16,32], index: 3, kind: output, shape index: {}]  }
   0x1   :  { %10 = vsyncpa [#allocation3 + $0x1], 0 }
   0x2   :  { %11 = vsyncpa [#allocation6], 0 }
   0x3   :  { %13 = vsyncpa [#allocation6 + $0x1], 0 }
   0x4   :  { %14 = vsyncpa [#allocation4], 0 }
   0x5   :  { %16 = vsyncpa [#allocation4 + $0x1], 0  ;;  %s824_s12 = smov 0   ;;  %s826_s13 = smov 0  }
   0x6   :  { %s828_s14 = smov 0   ;;  %s830_s15 = smov 0  }
   0x7   :  { %s832_s16 = smov 0   ;;  %s834_s17 = smov 0  }
   0x8 LB: > { %s528_s18 = sadd.s32 4294967295, %s795_s17   ;;  %s529_s19 = sadd.s32 4294967294, %s795_s17   ;;  %s795_s17 = sphi %s834_s17, %s22_s17   ;;  %s791_s16 = sphi %s832_s16, %s1082_s16   ;;  %s787_s15 = sphi %s830_s15, %s1081_s15   ;;  %s783_s14 = sphi %s828_s14, %s1080_s14   ;;  %s779_s13 = sphi %s826_s13, %s1079_s13   ;;  %s775_s12 = sphi %s824_s12, %s1078_s12  }
   0x9   : > { %s41_s20 = sadd.s32 1, %s791_s16  ;;  %s50_s21 = sadd.s32 1, %s783_s14 }
   0xa   : > { %p43_p0 = scmp.ge.s32.totalorder %s41_s20, 3  ;;  %p57_p1 = scmp.ne.s32.totalorder %s783_s14, %s779_s13 }
   0xb   : > { %p58_p2 = scmp.eq.s32.totalorder %s795_s17, 0  ;;  %p63_p3 = scmp.ne.s32.totalorder %s779_s13, %s775_s12 }
   0xc   : > { %s1084_s20 = smov (%p43_p0, %s41_s20), 0  ;;  %p64_p5 = scmp.eq.s32.totalorder %s528_s18, 0 }
   0xd   : > { %p865_p4 = por %p58_p2, %p57_p1  ;;  %s45_s23 = ssub.s32 %s791_s16, %s1084_s20 }
   0xe   : > { %p147_p6 = scmp.eq.s32.totalorder %s528_s18, 2  ;;  %p48_p7 = scmp.eq.s32.totalorder %s45_s23, 0 }
   0xf   : > { %p871_p8 = por %p64_p5, %p63_p3  ;;  %p153_p10 = scmp.eq.s32.totalorder %s529_s19, 2 }
  0x10   : > { %p875_p9 = por %p147_p6, %p57_p1  ;;  %p595_p12 = scmp.lt.s32.totalorder %s795_s17, 3 }
  0x11   : > { %s1069_s24 = scalar_select %p871_p8, 1, 0 }
  0x12   : > { %s1070_s25 = scalar_select %p875_p9, 1, 0 }
  0x13   : > { %s880_s26 = scalar_select %p48_p7, %s783_s14, %s50_s21  }
  0x14   : > { %p882_p11 = por %p153_p10, %p63_p3  ;;  %s888_s28 = sand.u32 1, %s783_s14  }
  0x15   : > { %s532_s29 = sshll.u32 %s888_s28, 4  ;;  %s550_s30 = sshll.u32 %s791_s16, 8 }
  0x16   : > { %s1071_s27 = scalar_select %p882_p11, 1, 0 }
  0x17   : > { %s895_s6 = scalar_lea.hbm %s1062_s0, %s550_s30  ;;  %s177_s7 = scalar_lea.vmem [#allocation2], %s532_s29 }
  0x18   : > { %s186_s8 = sshll.u32 %s177_s7, 4  ;;  %p901_p13 = pnand %p595_p12, %p865_p4  ;;  %s897_s8 = int_to_ptr.vmem [resolvable:$true] %s186_s8 }
  0x19   : > { %s174_s10 = scalar_lea.sflag [#allocation3], %s888_s28  ;;  %s649_s11 = scalar_lea.hbm %s895_s6, 256 }
  0x1a   : > { %p650_p1 = scmp.ne.s32.totalorder %s895_s6, %s649_s11  ;;  %p651_p2 = pneg %p901_p13 }
  0x1b   : > { %s654_s21 = scalar_lea.hbm %s1062_s0, 768  ;;  %p655_p4 = scmp.lt.u32.totalorder %s895_s6, %s1062_s0 }
  0x1c   : > { %p652_p3 = pnand %p651_p2, %p650_p1  ;;  %p656_p6 = scmp.lt.u32.totalorder %s654_s21, %s649_s11 }
  0x1d   : > { %p658_p10 = scmp.lt.u32.totalorder %s649_s11, %s895_s6 }
  0x1e   : > { %p653_p5 = pneg %p652_p3  ;;  %p657_p7 = por %p656_p6, %p655_p4 }
  0x20   : > { %p659_p12 = por %p658_p10, %p657_p7 }
  0x22   : > { %p660_p0 = pnand %p659_p12, %p653_p5 }
  0x24   : > { %663 = shalt.err (!%p660_p0)
}
  0x25   : > { %s664_s29 = scalar_lea.vmem %s897_s8, 256  ;;  %s797_s30 = smov [#allocation2]  }
  0x26   : > { %p665_p1 = scmp.ne.s32.totalorder %s897_s8, %s664_s29  ;;  %s669_s4 = sshll.u32 %s797_s30, 4  ;;  %s670_s4 = int_to_ptr.vmem [resolvable:$false] %s669_s4 }
  0x27   : > { %s671_s5 = scalar_lea.vmem %s670_s4, 512  ;;  %p672_p9 = scmp.lt.s32.totalorder %s897_s8, %s670_s4 }
  0x28   : > { %p667_p3 = pnand %p665_p1, %p651_p2  ;;  %p673_p4 = scmp.lt.s32.totalorder %s671_s5, %s664_s29 }
  0x2a   : > { %p668_p11 = pneg %p667_p3  ;;  %p674_p6 = por %p673_p4, %p672_p9 }
  0x2c   : > { %p675_p7 = pnand %p674_p6, %p668_p11 }
  0x2e   : > { %678 = shalt.err (!%p675_p7)
}
  0x2f   : > { %s798_s7 = smov 128   ;;  %s799_s11 = smov 8  }
  0x30   : > { %587 = dma.hbm_to_vmem [thread:$0]  (!%p901_p13), %s895_s6, 256, %s897_s8, %s174_s10, %s798_s7, %s798_s7, %s799_s11  }
  0x31   : > { %p225_p9 = scmp.lt.s32.totalorder %s795_s17, 4  ;;  %s535_s18 = sshll.u32 %s888_s28, 5 }
  0x32   : > { %s551_s19 = sshll.u32 %s791_s16, 9  ;;  %p1073_p11 = scmp.ge.s32.totalorder %s795_s17, 1 }
  0x33   : > { %s949_s29 = scalar_lea.hbm %s1063_s1, %s551_s19  ;;  %s200_s30 = scalar_lea.vmem [#allocation5], %s535_s18 }
  0x34   : > { %p942_p0 = pnand %p1073_p11, %p225_p9  ;;  %s208_s4 = sshll.u32 %s200_s30, 4  ;;  %s951_s4 = int_to_ptr.vmem [resolvable:$true] %s208_s4 }
  0x35   : > { %s197_s6 = scalar_lea.sflag [#allocation6], %s888_s28  ;;  %s679_s8 = scalar_lea.hbm %s949_s29, 512 }
  0x36   : > { %p680_p5 = scmp.ne.s32.totalorder %s949_s29, %s679_s8  ;;  %s684_s19 = scalar_lea.hbm %s1063_s1, 1536 }
  0x37   : > { %p685_p1 = scmp.lt.u32.totalorder %s949_s29, %s1063_s1  ;;  %p686_p3 = scmp.lt.u32.totalorder %s684_s19, %s679_s8 }
  0x38   : > { %p682_p10 = pnand %p680_p5, %p651_p2  ;;  %p688_p6 = scmp.lt.u32.totalorder %s679_s8, %s949_s29 }
  0x39   : > { %p687_p4 = por %p686_p3, %p685_p1 }
  0x3a   : > { %p683_p12 = pneg %p682_p10 }
  0x3b   : > { %p689_p7 = por %p688_p6, %p687_p4 }
  0x3d   : > { %p690_p9 = pnand %p689_p7, %p683_p12 }
  0x3f   : > { %693 = shalt.err (!%p690_p9)
}
  0x40   : > { %s694_s18 = scalar_lea.vmem %s951_s4, 512  ;;  %s800_s30 = smov [#allocation5]  }
  0x41   : > { %p695_p11 = scmp.ne.s32.totalorder %s951_s4, %s694_s18  ;;  %s699_s10 = sshll.u32 %s800_s30, 4  ;;  %s700_s10 = int_to_ptr.vmem [resolvable:$false] %s699_s10 }
  0x42   : > { %s701_s5 = scalar_lea.vmem %s700_s10, 1024  ;;  %p702_p8 = scmp.lt.s32.totalorder %s951_s4, %s700_s10 }
  0x43   : > { %p697_p5 = pnand %p695_p11, %p651_p2  ;;  %p703_p1 = scmp.lt.s32.totalorder %s701_s5, %s694_s18 }
  0x45   : > { %p698_p10 = pneg %p697_p5  ;;  %p704_p3 = por %p703_p1, %p702_p8 }
  0x47   : > { %p705_p4 = pnand %p704_p3, %p698_p10 }
  0x49   : > { %708 = shalt.err (!%p705_p4)
}
  0x4a   : > { %590 = dma.hbm_to_vmem [thread:$0]  (!%p901_p13), %s949_s29, 512, %s951_s4, %s197_s6, %s798_s7, %s798_s7, %s799_s11  }
  0x4b   : > { %229 = sbr.rel (%p942_p0) target bundleno = 327 (0x147), region = 32  ;;  %s985_s8 = sand.u32 (!%p942_p0), 1, %s779_s13  }
  0x4c   : > { %s539_s19 = sshll.u32 (!%p942_p0), %s985_s8, 4  ;;  %s232_s22 = scalar_lea.sflag (!%p942_p0), [#allocation3], %s985_s8 }
  0x4d   : > { %s235_s9 = scalar_lea.vmem (!%p942_p0), [#allocation2], %s539_s19  ;;  %p1075_p8 = scmp.ne.s32.totalorder (!%p942_p0), %s1069_s24, 0 }
  0x52   : > { %762 = dma.done.wait (%p1075_p8), %s232_s22, 256  }
  0x53   : > { %764 = vsyncadd (%p1075_p8), %s232_s22, 4294967040  ;;  %s540_s28 = sshll.u32 %s985_s8, 5  ;;  %s241_s7 = scalar_lea.sflag [#allocation6], %s985_s8 }
  0x54   : > { %s244_s11 = scalar_lea.vmem [#allocation5], %s540_s28 }
  0x55   : > { %766 = dma.done.wait (%p1075_p8), %s241_s7, 512  }
  0x56   : > { %768 = vsyncadd (%p1075_p8), %s241_s7, 4294966784  ;;  %vm299_vm0 = vcmask 261120   ;;  %v288_v0 = vld [vmem:[%s244_s11] sm:$0xff]  ;;  %v289_v1 = vld [vmem:[%s244_s11 + $0x8] sm:$0xff]  ;;  %p279_p13 = scmp.lt.s32.totalorder %s787_s15, 2  ;;  %s277_s6 = scalar_lea.vmem [#allocation7], %s539_s19 }
  0x57   : > { %v290_v2 = vld [vmem:[%s244_s11 + $0x10] sm:$0xff]  ;;  %v570_v3 = vpack.c.bf16 %v289_v1, %v288_v0  ;;  %v291_v4 = vld [vmem:[%s244_s11 + $0x18] sm:$0xff]  ;;  %s400_s23 = sshll.u32 %s277_s6, 4  ;;  %s552_s18 = sshll.u32 %s787_s15, 8  ;;  %s1007_s23 = int_to_ptr.vmem [resolvable:$true] %s400_s23 }
  0x58   : > { %v286_v5 = vld [vmem:[%s235_s9] sm:$0xff]  ;;  %v574_v6 = vpack.c.bf16 %v291_v4, %v290_v2  ;;  %v287_v7 = vld [vmem:[%s235_s9 + $0x8] sm:$0xff]  ;;  %s280_s24 = scalar_select %p279_p13, %s787_s15, 2 }
  0x59   : > { %567 = vmatprep.mubr.msk.f32.mxu0 %vm299_vm0, %v286_v5  ;;  %571 = vmatprep.subr.bf16.mxu0 %v570_v3  ;;  %s1012_s5 = scalar_lea.hbm %s1065_s3, %s552_s18  ;;  %s384_s19 = scalar_lea.sflag [#allocation4], %s985_s8 }
  0x5a   : > { %573 = vmatpush3.bf16.msra.mxu0 %v570_v3  ;;  %s284_s4 = scalar_lea.vmem %s1064_s2, %s280_s24  ;;  %s709_s15 = scalar_lea.vmem %s1007_s23, 256 }
  0x5b   : > { %575 = vmatprep.subr.bf16.mxu0 %v574_v6  ;;  %v542_v8 = vld [vmem:[%s284_s4] ss:$0 sm:$0xff]  ;;  %p710_p2 = scmp.ne.s32.totalorder %s1007_s23, %s709_s15  ;;  %p1076_p0 = scmp.ne.s32.totalorder %s1070_s25, 0 }
  0x5c   : > { %s801_s22 = smov [#allocation7]  }
  0x5d   : > { %p711_p12 = pnand %p710_p2, %p1076_p0  ;;  %s713_s9 = sshll.u32 %s801_s22, 4  ;;  %s714_s9 = int_to_ptr.vmem [resolvable:$false] %s713_s9 }
  0x5e   : > { %577 = vmatpush3.bf16.msra.mxu0 %v574_v6  ;;  %s715_s28 = scalar_lea.vmem %s714_s9, 512  ;;  %p716_p7 = scmp.lt.s32.totalorder %s1007_s23, %s714_s9 }
  0x5f   : > { %p712_p6 = pneg %p711_p12  ;;  %p717_p9 = scmp.lt.s32.totalorder %s715_s28, %s709_s15 }
  0x61   : > { %568 = vmatmul.mubr.msk.f32.vlgmr.msra.gmra.mrb[0].mxu0 %vm299_vm0, %v287_v7  ;;  %p718_p11 = por %p717_p9, %p716_p7 }
  0x63   : > { %p719_p5 = pnand %p718_p11, %p712_p6 }
 0x134   : > { %v569_v9 = vpop.f32.mrb[0].mxu0 }
 0x135   : > { %v378_v10 = vadd.f32 %v569_v9, %v542_v8  ;;  %v372_v11 = vpop.f32.mrb[1].mxu0 }
 0x136   : > { %v373_v12 = vadd.f32 %v542_v8, %v372_v11 }
 0x137   : > { %382 = vst.msk [vmem:[%s277_s6 + $0x8] sm:$0xff] %vm299_vm0, %v378_v10 }
 0x138   : > { %381 = vst.msk [vmem:[%s277_s6] sm:$0xff] %vm299_vm0, %v373_v12 }
 0x139   : > { %722 = shalt.err (!%p719_p5)
}
 0x13a   : > { %s723_s7 = scalar_lea.hbm %s1012_s5, 256  ;;  %s727_s21 = scalar_lea.hbm %s1065_s3, 768 }
 0x13b   : > { %p724_p10 = scmp.ne.s32.totalorder %s1012_s5, %s723_s7  ;;  %p728_p4 = scmp.lt.u32.totalorder %s1012_s5, %s1065_s3 }
 0x13c   : > { %p729_p8 = scmp.lt.u32.totalorder %s727_s21, %s723_s7  ;;  %p731_p2 = scmp.lt.u32.totalorder %s723_s7, %s1012_s5 }
 0x13d   : > { %p725_p1 = pnand %p724_p10, %p1076_p0 }
 0x13e   : > { %p730_p13 = por %p729_p8, %p728_p4 }
 0x13f   : > { %p726_p3 = pneg %p725_p1 }
 0x140   : > { %p732_p12 = por %p731_p2, %p730_p13 }
 0x142   : > { %p733_p6 = pnand %p732_p12, %p726_p3 }
 0x144   : > { %736 = shalt.err (!%p733_p6)
}
 0x145   : > { %s802_s6 = smov 128   ;;  %s803_s18 = smov 8  }
 0x146   : > { %582 = dma.vmem_to_hbm [thread:$0]  (%p1076_p0), %s1007_s23, 256, %s1012_s5, %s384_s19, %s802_s6, %s802_s6, %s803_s18  }
 0x147 PF: > { %p596_p7 = scmp.ge.s32.totalorder %s795_s17, 2  ;;  %s415_s30 = sand.u32 1, %s775_s12  }
 0x148   : > { %p1077_p9 = scmp.ne.s32.totalorder %s1071_s27, 0  ;;  %s416_s10 = scalar_lea.sflag [#allocation4], %s415_s30 }
 0x14a   : > { %p592_p11 = pnand %p596_p7, %p1077_p9 }
 0x14c   : > { %770 = dma.done.wait (!%p592_p11), %s416_s10, 256  }
 0x14d   : > { %772 = vsyncadd (!%p592_p11), %s416_s10, 4294967040  ;;  %s22_s17 = sadd.s32 1, %s795_s17   ;;  %s1078_s12 = smov %s779_s13 }
 0x14e   : > { %p19_p5 = scmp.ge.s32.totalorder %s22_s17, 5   ;;  %s1079_s13 = smov %s783_s14 }
 0x14f   : > { %s1080_s14 = smov %s880_s26  ;;  %s1081_s15 = smov %s791_s16 }
 0x150   : > { %s1082_s16 = smov %s1084_s20  ;;  %21 = sbr.rel (!%p19_p5) target bundleno = 8 (0x8), region = 93 }
 0x157   :  { %421 = vsyncpa [#allocation3], 1 }
 0x158   :  { %423 = vsyncpa [#allocation3 + $0x1], 1 }
 0x159   :  { %424 = vsyncpa [#allocation6], 1 }
 0x15a   :  { %426 = vsyncpa [#allocation6 + $0x1], 1 }
 0x15b   :  { %427 = vsyncpa [#allocation4], 1 }
 0x15c   :  { %429 = vsyncpa [#allocation4 + $0x1], 1 }

</bundles_post_ra>
